<compile_context>
chip_gen: v6e
topology: v6e:2x2x1
jax: 0.10.0
libtpu: 0.0.40
codegen_flags: <defaults>
</compile_context>

<pallas_src>
import functools

import jax
import jax.numpy as jnp
from jax import lax
from jax.experimental import pallas as pl
from jax.experimental.pallas import tpu as pltpu

_EPS = 1e-6          # matches torch.nn.functional.pairwise_distance default eps
_OUT_SUB = 8         # minimal unmasked f32 output tile (sublanes)
_OUT_LANE = 128      # minimal unmasked f32 output tile (lanes)
_MiB = 1024 * 1024


# --------------------------------------------------------------------------- #
# Hardware-aware sizing helpers
# --------------------------------------------------------------------------- #
def _device_kind():
    try:
        return jax.devices()[0].device_kind.lower()
    except Exception:
        return ""


def _vmem_budget():
    """Return (working-set budget bytes, vmem_limit_bytes) for this chip."""
    kind = _device_kind()
    cap = None
    try:
        cap = getattr(pltpu.get_tpu_info(), "vmem_capacity_bytes", None)
    except Exception:
        cap = None

    if "v7" in kind or "7x" in kind:
        budget, limit = 28 * _MiB, 48 * _MiB      # 64 MiB physical VMEM: stay clear
    elif "v6" in kind:
        budget, limit = 40 * _MiB, 96 * _MiB      # 128 MiB physical, 32 MiB scoped default
    elif "v5 lite" in kind or "v5e" in kind or "v5lite" in kind:
        budget, limit = 20 * _MiB, 64 * _MiB      # 128 MiB physical, 16 MiB scoped default
    elif "v5" in kind or "v4" in kind:
        budget, limit = 32 * _MiB, 64 * _MiB
    else:
        budget, limit = 16 * _MiB, 48 * _MiB      # unknown chip: conservative

    if isinstance(cap, int) and cap > 0:
        limit = min(limit, (cap * 3) // 4)
        budget = min(budget, (limit * 3) // 5)
    return budget, limit


def _detect_num_tensorcores():
    """TensorCores addressable by one kernel launch (1 on v5e/v6e, 2 on v7x)."""
    try:
        dev = jax.devices()[0]
    except Exception:
        return 1
    for attr in ("num_cores", "core_count", "num_tensorcores"):
        v = getattr(dev, attr, None)
        if isinstance(v, int) and v > 0:
            return max(1, min(v, 2))
    try:
        info = pltpu.get_tpu_info()
        for attr in ("num_cores", "tensorcore_count", "core_count"):
            v = getattr(info, attr, None)
            if isinstance(v, int) and v > 0:
                return max(1, min(v, 2))
    except Exception:
        pass
    return 1


def _choose_block_rows(batch, dim, itemsize, budget_bytes):
    """Largest row tile (multiple of 128, or full batch) fitting the VMEM budget.

    Per-row VMEM footprint:
      * 2 embeddings x 2 pipeline buffers, native dtype : 4 * dim * itemsize
      * f32 upcast temporaries (~3 tile-sized temps)    : 12 * dim
      * (tb, 1) label block padded to 128 lanes, x2     : 1024
    """
    per_row = 4 * dim * itemsize + 12 * dim + 1024
    tb = int(budget_bytes // max(per_row, 1))
    if tb >= batch:
        return batch
    tb = max(128, (tb // 128) * 128)
    return batch if tb >= batch else tb


# --------------------------------------------------------------------------- #
# Kernel
# --------------------------------------------------------------------------- #
def _contrastive_loss_kernel(margin_ref, e1_ref, e2_ref, lab_ref, out_ref, acc_ref,
                             *, batch, block_rows, tiles_per_core):
    c = pl.program_id(0)          # core / partial-sum index
    i = pl.program_id(1)          # batch-tile index within this core

    # Zero this core's (1,1) accumulator scratch at its first tile.
    @pl.when(i == 0)
    def _():
        acc_ref[...] = jnp.zeros_like(acc_ref)

    e1 = e1_ref[...].astype(jnp.float32)        # (TB, D)
    e2 = e2_ref[...].astype(jnp.float32)        # (TB, D)
    lab = lab_ref[...].astype(jnp.float32)      # (TB, 1)

    # pairwise_distance: ||e1 - e2 + eps||_2 along last dim, keepdim=True.
    diff = e1 - e2 + _EPS                                       # (TB, D)
    dist_sq = jnp.sum(diff * diff, axis=-1, keepdims=True)      # (TB, 1)
    dist = jnp.sqrt(dist_sq)                                    # hinge term only

    margin = margin_ref[0]
    hinge = jnp.maximum(margin - dist, 0.0)
    per_pair = lab * dist_sq + (1.0 - lab) * (hinge * hinge)    # (TB, 1)

    # Mask rows outside the real batch (partial last tile and clamped
    # duplicate tiles on the multi-core path); select() also stops any
    # NaN/Inf garbage from padded rows reaching the sum.
    row_start = (c * tiles_per_core + i) * block_rows
    row_ids = row_start + lax.broadcasted_iota(jnp.int32, per_pair.shape, 0)
    per_pair = jnp.where(row_ids < batch, per_pair, 0.0)

    # Single-element accumulate: no per-step broadcast / full-vreg RMW.
    acc_ref[...] += jnp.sum(per_pair, axis=0, keepdims=True)    # (1, 1)

    # Write the lane-dense output block exactly once per core.
    @pl.when(i == tiles_per_core - 1)
    def _():
        out_ref[...] = jnp.broadcast_to(acc_ref[...], out_ref.shape)


# --------------------------------------------------------------------------- #
# Wrapper
# --------------------------------------------------------------------------- #
def contrastive_loss(embedding1, embedding2, label, margin=1.0,
                     block_rows=None, num_cores=None):
    """embedding1, embedding2: (B, D) float; label: (B, 1) float (1 = positive pair)."""
    B, D = embedding1.shape
    assert embedding2.shape == (B, D)
    assert label.shape == (B, 1)

    itemsize = jnp.dtype(embedding1.dtype).itemsize
    budget, vmem_limit = _vmem_budget()

    if block_rows is None:
        tb = _choose_block_rows(B, D, itemsize, budget)
    else:
        tb = int(block_rows)
        if tb < B:
            tb = max(128, (tb // 128) * 128)    # keep blocks 128-row aligned
        tb = min(tb, B) if tb < B else B
    num_blocks = -(-B // tb)

    detected_cores = _detect_num_tensorcores()
    ncores = detected_cores if num_cores is None else int(num_cores)
    ncores = max(1, min(ncores, num_blocks))
    tiles_per_core = -(-num_blocks // ncores)

    # Only claim core-parallelism when the axis maps to real TensorCores.
    if ncores > 1 and ncores <= detected_cores and hasattr(pltpu, "CORE_PARALLEL"):
        dim_sem = (pltpu.CORE_PARALLEL, pltpu.ARBITRARY)
    else:
        dim_sem = ("parallel", "arbitrary")

    def row_block(c, i, _margin):
        # Clamp logically-out-of-range blocks in-bounds; the kernel masks them.
        return (jnp.minimum(c * tiles_per_core + i, num_blocks - 1), 0)

    kernel = functools.partial(
        _contrastive_loss_kernel,
        batch=B, block_rows=tb, tiles_per_core=tiles_per_core)

    grid_spec = pltpu.PrefetchScalarGridSpec(
        num_scalar_prefetch=1,                       # margin lives in SMEM
        grid=(ncores, tiles_per_core),
        in_specs=[
            pl.BlockSpec((tb, D), row_block),        # embedding1
            pl.BlockSpec((tb, D), row_block),        # embedding2
            pl.BlockSpec((tb, 1), row_block),        # label
        ],
        out_specs=pl.BlockSpec((_OUT_SUB, _OUT_LANE), lambda c, i, _m: (c, 0)),
        scratch_shapes=[pltpu.VMEM((1, 1), jnp.float32)],
    )

    cost = pl.CostEstimate(
        flops=int(5 * B * D + 8 * B),
        transcendentals=int(B),
        bytes_accessed=int(2 * B * D * itemsize
                           + B * jnp.dtype(label.dtype).itemsize
                           + ncores * _OUT_SUB * _OUT_LANE * 4),
    )

    margin_arr = jnp.asarray([margin], dtype=jnp.float32)

    partials = pl.pallas_call(
        kernel,
        out_shape=jax.ShapeDtypeStruct((ncores * _OUT_SUB, _OUT_LANE), jnp.float32),
        grid_spec=grid_spec,
        compiler_params=pltpu.CompilerParams(
            dimension_semantics=dim_sem,
            vmem_limit_bytes=int(vmem_limit)),
        cost_estimate=cost,
    )(margin_arr, embedding1, embedding2, label)

    # One partial sum per core (replicated within its (8,128) block).
    per_core = partials.reshape(ncores, _OUT_SUB, _OUT_LANE)[:, 0, 0]
    return jnp.sum(per_core) / (2.0 * B)


def contrastive_loss_ref(embedding1, embedding2, label, margin=1.0):
    """Pure-JAX reference mirroring the PyTorch forward."""
    e1 = embedding1.astype(jnp.float32)
    e2 = embedding2.astype(jnp.float32)
    lab = label.astype(jnp.float32)
    diff = e1 - e2 + _EPS
    dist = jnp.sqrt(jnp.sum(diff * diff, axis=-1, keepdims=True))
    pos = lab * dist ** 2
    neg = (1.0 - lab) * jnp.maximum(margin - dist, 0.0) ** 2
    return jnp.mean(pos + neg) / 2.0


if __name__ == "__main__":
    key = jax.random.PRNGKey(0)
    k1, k2, k3, k4, k5, k6 = jax.random.split(key, 6)

    # 1) Small single-block sanity check (tb == B, grid (1,1)).
    B, D = 8, 32
    e1 = jax.random.normal(k1, (B, D), dtype=jnp.float32)
    e2 = jax.random.normal(k2, (B, D), dtype=jnp.float32)
    lab = jax.random.bernoulli(k3, 0.5, (B, 1)).astype(jnp.float32)

    loss = jax.block_until_ready(contrastive_loss(e1, e2, lab, margin=1.0))
    ref = contrastive_loss_ref(e1, e2, lab, margin=1.0)
    assert jnp.allclose(loss, ref, atol=1e-5, rtol=1e-4), (loss, ref)

    # 2) Gridded path: multiple 128-row tiles, masked partial last tile,
    #    non-default margin.
    B2, D2 = 300, 32
    e1b = jax.random.normal(k4, (B2, D2), dtype=jnp.float32)
    e2b = jax.random.normal(k5, (B2, D2), dtype=jnp.float32)
    labb = jax.random.bernoulli(k6, 0.5, (B2, 1)).astype(jnp.float32)

    loss2 = jax.block_until_ready(
        contrastive_loss(e1b, e2b, labb, margin=0.75, block_rows=128))
    ref2 = contrastive_loss_ref(e1b, e2b, labb, margin=0.75)
    assert jnp.allclose(loss2, ref2, atol=1e-5, rtol=1e-4), (loss2, ref2)

    # 3) Two partial-sum blocks (forced), clamped duplicate tile fully masked,
    #    bf16 inputs upcast in-kernel.  Safe on single-TC chips: the forced
    #    extra core falls back to a serial 'parallel' axis, never CORE_PARALLEL.
    e1c = e1b.astype(jnp.bfloat16)
    e2c = e2b.astype(jnp.bfloat16)
    loss3 = jax.block_until_ready(
        contrastive_loss(e1c, e2c, labb, margin=1.0, block_rows=128, num_cores=2))
    ref3 = contrastive_loss_ref(e1c, e2c, labb, margin=1.0)
    assert jnp.allclose(loss3, ref3, atol=1e-5, rtol=1e-4), (loss3, ref3)

    print("KERNEL_OK")
</pallas_src>

<mosaic_0001>
module attributes {stable_mosaic.version = 11 : i64} {
  func.func @_contrastive_loss_kernel(%arg0: i32, %arg1: i32, %arg2: memref<1xf32, #tpu.memory_space<smem>>, %arg3: memref<8x32xf32, #tpu.memory_space<vmem>>, %arg4: memref<8x32xf32, #tpu.memory_space<vmem>>, %arg5: memref<8x1xf32, #tpu.memory_space<vmem>>, %arg6: memref<8x128xf32, #tpu.memory_space<vmem>>, %arg7: memref<1x1xf32, #tpu.memory_space<vmem>>) attributes {dimension_semantics = [#tpu.dimension_semantics<parallel>, #tpu.dimension_semantics<arbitrary>], iteration_bounds = array<i64: 1, 1>, scalar_prefetch = 1 : i64, scratch_operands = 1 : i64, tpu.core_type = #tpu.core_type<tc>, window_params = [{transform_indices = @transform_0, window_bounds = array<i64: 8, 32>}, {transform_indices = @transform_1, window_bounds = array<i64: 8, 32>}, {transform_indices = @transform_2, window_bounds = array<i64: 8, 1>}, {transform_indices = @transform_3, window_bounds = array<i64: 8, 128>}]} {
    %c0_i32 = arith.constant 0 : i32
    %0 = arith.cmpi eq, %arg1, %c0_i32 : i32
    %1 = arith.extui %0 : i1 to i32
    %c0_i32_0 = arith.constant 0 : i32
    %2 = arith.cmpi ne, %1, %c0_i32_0 : i32
    scf.if %2 {
      %cst_19 = arith.constant 0.000000e+00 : f32
      %42 = vector.broadcast %cst_19 : f32 to vector<1x1xf32>
      %c0_20 = arith.constant 0 : index
      %c0_21 = arith.constant 0 : index
      %43 = vector.load %arg7[%c0_20, %c0_21] : memref<1x1xf32, #tpu.memory_space<vmem>>, vector<1x1xf32>
      tpu.vector_store %arg7[%c0_20, %c0_21], %42 {strides = array<i32>} : memref<1x1xf32, #tpu.memory_space<vmem>>, vector<1x1xf32>,
    } else {
    }
    %c0 = arith.constant 0 : index
    %c0_1 = arith.constant 0 : index
    %3 = vector.load %arg3[%c0, %c0_1] : memref<8x32xf32, #tpu.memory_space<vmem>>, vector<8x32xf32>
    %c0_2 = arith.constant 0 : index
    %c0_3 = arith.constant 0 : index
    %4 = vector.load %arg4[%c0_2, %c0_3] : memref<8x32xf32, #tpu.memory_space<vmem>>, vector<8x32xf32>
    %c0_4 = arith.constant 0 : index
    %c0_5 = arith.constant 0 : index
    %5 = vector.load %arg5[%c0_4, %c0_5] : memref<8x1xf32, #tpu.memory_space<vmem>>, vector<8x1xf32>
    %6 = arith.subf %3, %4 : vector<8x32xf32>
    %cst = arith.constant 9.99999997E-7 : f32
    %7 = vector.broadcast %cst : f32 to vector<8x32xf32>
    %8 = arith.addf %6, %7 : vector<8x32xf32>
    %9 = arith.mulf %8, %8 : vector<8x32xf32>
    %cst_6 = arith.constant dense<0.000000e+00> : vector<8xf32>
    %10 = vector.multi_reduction <add>, %9, %cst_6 [1] : vector<8x32xf32> to vector<8xf32>
    %11 = vector.shape_cast %10 : vector<8xf32> to vector<8x1xf32>
    %12 = math.sqrt %11 : vector<8x1xf32>
    %c0_7 = arith.constant 0 : index
    %13 = memref.load %arg2[%c0_7] : memref<1xf32, #tpu.memory_space<smem>>
    %14 = vector.broadcast %13 : f32 to vector<8x1xf32>
    %15 = arith.subf %14, %12 : vector<8x1xf32>
    %cst_8 = arith.constant 0.000000e+00 : f32
    %16 = vector.broadcast %cst_8 : f32 to vector<8x1xf32>
    %17 = arith.maximumf %15, %16 : vector<8x1xf32>
    %18 = arith.mulf %5, %11 : vector<8x1xf32>
    %cst_9 = arith.constant 1.000000e+00 : f32
    %19 = vector.broadcast %cst_9 : f32 to vector<8x1xf32>
    %20 = arith.subf %19, %5 : vector<8x1xf32>
    %21 = arith.mulf %17, %17 : vector<8x1xf32>
    %22 = arith.mulf %20, %21 : vector<8x1xf32>
    %23 = arith.addf %18, %22 : vector<8x1xf32>
    %c1_i32 = arith.constant 1 : i32
    %24 = arith.muli %arg0, %c1_i32 : i32
    %25 = arith.addi %24, %arg1 : i32
    %c8_i32 = arith.constant 8 : i32
    %26 = arith.muli %25, %c8_i32 : i32
    %27 = tpu.iota {dimensions = array<i32: 0>} : vector<8x1xi32>
    %28 = vector.broadcast %26 : i32 to vector<8x1xi32>
    %29 = arith.addi %28, %27 : vector<8x1xi32>
    %c8_i32_10 = arith.constant 8 : i32
    %30 = vector.broadcast %c8_i32_10 : i32 to vector<8x1xi32>
    %31 = arith.cmpi slt, %29, %30 : vector<8x1xi32>
    %cst_11 = arith.constant 0.000000e+00 : f32
    %32 = vector.broadcast %cst_11 : f32 to vector<8x1xf32>
    %33 = arith.select %31, %23, %32 : vector<8x1xi1>, vector<8x1xf32>
    %c0_12 = arith.constant 0 : index
    %c0_13 = arith.constant 0 : index
    %34 = vector.load %arg7[%c0_12, %c0_13] : memref<1x1xf32, #tpu.memory_space<vmem>>, vector<1x1xf32>
    %cst_14 = arith.constant dense<0.000000e+00> : vector<1xf32>
    %35 = vector.multi_reduction <add>, %33, %cst_14 [0] : vector<8x1xf32> to vector<1xf32>
    %36 = vector.shape_cast %35 : vector<1xf32> to vector<1x1xf32>
    %37 = arith.addf %34, %36 : vector<1x1xf32>
    %c0_15 = arith.constant 0 : index
    %c0_16 = arith.constant 0 : index
    %38 = vector.load %arg7[%c0_15, %c0_16] : memref<1x1xf32, #tpu.memory_space<vmem>>, vector<1x1xf32>
    tpu.vector_store %arg7[%c0_15, %c0_16], %37 {strides = array<i32>} : memref<1x1xf32, #tpu.memory_space<vmem>>, vector<1x1xf32>,
    %c0_i32_17 = arith.constant 0 : i32
    %39 = arith.cmpi eq, %arg1, %c0_i32_17 : i32
    %40 = arith.extui %39 : i1 to i32
    %c0_i32_18 = arith.constant 0 : i32
    %41 = arith.cmpi ne, %40, %c0_i32_18 : i32
    scf.if %41 {
      %c0_19 = arith.constant 0 : index
      %c0_20 = arith.constant 0 : index
      %42 = vector.load %arg7[%c0_19, %c0_20] : memref<1x1xf32, #tpu.memory_space<vmem>>, vector<1x1xf32>
      %43 = vector.shape_cast %42 : vector<1x1xf32> to vector<1x1xf32>
      %44 = vector.broadcast %43 : vector<1x1xf32> to vector<8x128xf32>
      %c0_21 = arith.constant 0 : index
      %c0_22 = arith.constant 0 : index
      %45 = vector.load %arg6[%c0_21, %c0_22] : memref<8x128xf32, #tpu.memory_space<vmem>>, vector<8x128xf32>
      tpu.vector_store %arg6[%c0_21, %c0_22], %44 {strides = array<i32>} : memref<8x128xf32, #tpu.memory_space<vmem>>, vector<8x128xf32>,
    } else {
    }
    return
  }
  func.func @transform_0(%arg0: i32, %arg1: i32, %arg2: memref<1xf32, #tpu.memory_space<smem>>) -> (i32, i32) {
    %c1_i32 = arith.constant 1 : i32
    %0 = arith.muli %arg0, %c1_i32 : i32
    %1 = arith.addi %0, %arg1 : i32
    %c0_i32 = arith.constant 0 : i32
    %2 = arith.minsi %1, %c0_i32 : i32
    %c0_i32_0 = arith.constant 0 : i32
    %c0_i32_1 = arith.constant 0 : i32
    return %2, %c0_i32_0 : i32, i32
  }
  func.func @transform_1(%arg0: i32, %arg1: i32, %arg2: memref<1xf32, #tpu.memory_space<smem>>) -> (i32, i32) {
    %c1_i32 = arith.constant 1 : i32
    %0 = arith.muli %arg0, %c1_i32 : i32
    %1 = arith.addi %0, %arg1 : i32
    %c0_i32 = arith.constant 0 : i32
    %2 = arith.minsi %1, %c0_i32 : i32
    %c0_i32_0 = arith.constant 0 : i32
    %c0_i32_1 = arith.constant 0 : i32
    return %2, %c0_i32_0 : i32, i32
  }
  func.func @transform_2(%arg0: i32, %arg1: i32, %arg2: memref<1xf32, #tpu.memory_space<smem>>) -> (i32, i32) {
    %c1_i32 = arith.constant 1 : i32
    %0 = arith.muli %arg0, %c1_i32 : i32
    %1 = arith.addi %0, %arg1 : i32
    %c0_i32 = arith.constant 0 : i32
    %2 = arith.minsi %1, %c0_i32 : i32
    %c0_i32_0 = arith.constant 0 : i32
    %c0_i32_1 = arith.constant 0 : i32
    return %2, %c0_i32_0 : i32, i32
  }
  func.func @transform_3(%arg0: i32, %arg1: i32, %arg2: memref<1xf32, #tpu.memory_space<smem>>) -> (i32, i32) {
    %c0_i32 = arith.constant 0 : i32
    %c0_i32_0 = arith.constant 0 : i32
    return %arg0, %c0_i32 : i32, i32
  }
}

</mosaic_0001>

<bundles_post_ra>
// kernel: tpu_custom_call.1
= control target key start
LH: loop header
LB: loop body
LE: loop exit
PB: predicated region body
PF: predicated region fallthrough
CT: control target
= control target key end

     0   :  { %10 = vsyncpa [#allocation6], 0  ;;  %s284_s0 = inlined_call_operand.<no memory space> [shape: f32[1], index: 0, kind: input, shape index: {}]   ;;  %s285_s1 = inlined_call_operand.vmem [shape: f32[8,32], index: 1, kind: input, shape index: {}]   ;;  %s286_s2 = inlined_call_operand.hbm [shape: f32[8,32], index: 2, kind: input, shape index: {}]   ;;  %s287_s3 = inlined_call_operand.vmem [shape: f32[8,1], index: 3, kind: input, shape index: {}]   ;;  %s288_s4 = inlined_call_operand.hbm [shape: f32[8,128], index: 4, kind: output, shape index: {}]  }
   0x1   :  { %11 = vsyncpa [#allocation7], 0  ;;  %s238_s15 = smov [#allocation5]  }
   0x2   :  { %s35_s16 = sshll.u32 %s238_s15, 4  ;;  %s36_s16 = int_to_ptr.vmem [resolvable:$true] %s35_s16 }
   0x3   :  { %s202_s17 = scalar_lea.vmem %s36_s16, 128  ;;  %p207_p1 = scmp.lt.s32.totalorder %s36_s16, %s36_s16 }
   0x4   :  { %p203_p0 = scmp.ne.s32.totalorder %s36_s16, %s202_s17  ;;  %p208_p2 = scmp.lt.s32.totalorder %s202_s17, %s202_s17 }
   0x6   :  { %p209_p3 = por %p208_p2, %p207_p1 }
   0x8   :  { %p210_p4 = pnand %p209_p3, %p203_p0 }
   0xa   :  { %213 = shalt.err (!%p210_p4)
}
   0xb   :  { %38 = dma.hbm_to_vmem [thread:$0]  %s286_s2, 128, %s36_s16, [#allocation6]  }
   0xc   :  { %234 = dma.done.wait [#allocation6], 128  }
   0xd   :  { %235 = vsyncadd [#allocation6], 4294967168  ;;  %vm95_vm0 = vcmask 0   ;;  %v239_v0 = vmov 0.0   ;;  %v97_v1 = vld [vmem:[%s285_s1] sm:$0xff]  ;;  %vm103_vm1 = vcmask 261120   ;;  %v115_v11 = vstv %s284_s0 }
   0xe   :  { %96 = vst.msk [vmem:[#allocation2] sm:$0x1] %vm95_vm0, %v239_v0  ;;  %v98_v2 = vld [vmem:[#allocation5] sm:$0xff]  ;;  %v240_v7 = vmov 0   ;;  %vm132_vm4 = vcmask 7168   ;;  %s241_s0 = smov [#allocation8]  }
   0xf   :  { %v100_v3 = vsub.f32 %v97_v1, %v98_v2  ;;  %191 = vset.pattern.permute.xlu0 %v240_v7  ;;  %v99_v16 = vld [vmem:[%s287_s3] sm:$0xff]  ;;  %s163_s3 = sshll.u32 %s241_s0, 4  ;;  %s164_s3 = int_to_ptr.vmem [resolvable:$true] %s163_s3 }
  0x10   :  { %v119_v17 = vsub.f32 1.0, %v99_v16  ;;  %s214_s24 = scalar_lea.vmem %s164_s3, 128  ;;  %p219_p6 = scmp.lt.s32.totalorder %s164_s3, %s164_s3 }
  0x11   :  { %v101_v4 = vadd.f32 1e-06, %v100_v3  ;;  %p215_p5 = scmp.ne.s32.totalorder %s164_s3, %s214_s24  ;;  %p220_p7 = scmp.lt.s32.totalorder %s214_s24, %s214_s24 }
  0x13   :  { %v102_v5 = vmul.f32 %v101_v4, %v101_v4  ;;  %p221_p8 = por %p220_p7, %p219_p6 }
  0x15   :  { %v104_v6 = vsel %vm103_vm1, %v102_v5, 0.0  ;;  %v131_v29 = vld [vmem:[#allocation2] sm:$0x1]  ;;  %p222_p9 = pnand %p221_p8, %p215_p5 }
  0x16   :  { %105 = vadd.xlane.f32.xlu0 %v104_v6 }
  0x9f   :  { %v106_v8 = vpop.xlane.xlu0 %105 }
  0xa0   :  { %192 = vrsqrt.f32 %v106_v8  ;;  %vm109_vm2 = vcmp.eq.f32.partialorder %v106_v8, inf  ;;  %v112_v12 = vand.u32 2147483648, %v106_v8  ;;  %vm111_vm3 = vcmp.eq.f32.partialorder %v106_v8, 0.0 }
  0xa1   :  { %v118_v20 = vmul.f32 %v106_v8, %v99_v16 }
  0xad   :  { %v193_v9 = vpop.eup %192 }
  0xae   :  { %v108_v10 = vmul.f32 %v193_v9, %v106_v8 }
  0xb0   :  { %v110_v13 = vsel %vm109_vm2, %v106_v8, %v108_v10 }
  0xb1   :  { %v113_v14 = vsel %vm111_vm3, %v112_v12, %v110_v13 }
  0xb2   :  { %v116_v15 = vsub.f32 %v115_v11, %v113_v14 }
  0xb4   :  { %v117_v18 = vmax.f32 %v116_v15, 0.0 }
  0xb6   :  { %v120_v19 = vmul.f32 %v117_v18, %v117_v18 }
  0xb8   :  { %v121_v21 = vmul.f32 %v120_v19, %v119_v17 }
  0xba   :  { %v122_v22 = vadd.f32 %v121_v21, %v118_v20 }
  0xbc   :  { %v133_v23 = vsel %vm132_vm4, %v122_v22, 0.0 }
  0xbd   :  { %v134_v24 = vrot.slane %v133_v23, 4 }
  0xbf   :  { %v135_v25 = vadd.f32 %v134_v24, %v133_v23 }
  0xc1   :  { %v136_v26 = vrot.slane %v135_v25, 2 }
  0xc3   :  { %v137_v27 = vadd.f32 %v136_v26, %v135_v25 }
  0xc5   :  { %v138_v28 = vrot.slane %v137_v27, 1 }
  0xc7   :  { %v139_v30 = vadd.f32 %v138_v28, %v137_v27 }
  0xc9   :  { %v140_v31 = vadd.f32 %v139_v30, %v131_v29 }
  0xcb   :  { %142 = vst.msk [vmem:[#allocation2] sm:$0x1] %vm95_vm0, %v140_v31 }
  0xd2   :  { %v186_v32 = vld [vmem:[#allocation2] ss:$0 sm:$0xff] }
  0xd3   :  { %153 = vperm.xlu0 %191, %v186_v32  }
 0x14e   :  { %v154_v33 = vpop.permute.xlu0 %153 }
 0x14f   :  { %156 = vst [vmem:[#allocation8] sm:$0xff] %v154_v33 }
 0x150   :  { %225 = shalt.err (!%p222_p9)
}
 0x151   :  { %166 = dma.vmem_to_hbm [thread:$0]  %s164_s3, 128, %s288_s4, [#allocation7]  }
 0x152   :  { %236 = dma.done.wait [#allocation7], 128  }
 0x153   :  { %237 = vsyncadd [#allocation7], 4294967168 }
 0x154   :  { %170 = vsyncpa [#allocation6], 1 }
 0x155   :  { %171 = vsyncpa [#allocation7], 1 }

</bundles_post_ra>
